<compile_context>
chip_gen: v7x
topology: tpu7x:2x2x1
jax: 0.10.0
libtpu: 0.0.40
codegen_flags: <defaults>
</compile_context>

<pallas_src>
import math
from functools import partial

import jax
import jax.numpy as jnp
from jax.experimental import pallas as pl
from jax.experimental.pallas import tpu as pltpu


# ----------------------------- Pallas kernel --------------------------------

def _make_mlp_kernel(num_linear, use_bf16_mxu):
    """Fused MLP: num_linear matmuls with Softplus(beta=100, threshold=20) between."""
    mxu_dtype = jnp.bfloat16 if use_bf16_mxu else jnp.float32

    def kernel(x_ref, *refs):
        w_refs = refs[:num_linear]
        b_refs = refs[num_linear:2 * num_linear]
        o_ref = refs[2 * num_linear]

        h = x_ref[...].astype(jnp.float32)            # (dim_in, tile) feature-major

        for li in range(num_linear):
            w = w_refs[li][...].astype(mxu_dtype)     # (d_out, d_in), VMEM-resident
            b = b_refs[li][...]                       # (d_out, 1) -> lane broadcast
            # (d_out, d_in) @ (d_in, tile) -> (d_out, tile); lane-dense result.
            h = jnp.dot(w, h.astype(mxu_dtype),
                        preferred_element_type=jnp.float32) + b

            if li < num_linear - 1:
                # torch.nn.Softplus(beta=100, threshold=20):
                #   y = x                        if beta*x > threshold
                #   y = log1p(exp(beta*x))/beta  otherwise
                # Clamp before exp so garbage tail-block columns stay finite.
                bh = 100.0 * h
                soft = jnp.log1p(jnp.exp(jnp.minimum(bh, 20.0))) * (1.0 / 100.0)
                h = jnp.where(bh > 20.0, h, soft)

        # output_activation = Identity
        o_ref[...] = h.astype(o_ref.dtype)

    return kernel


# -------------------------- tiling / generation config ----------------------

def _round_up(x, m):
    return ((x + m - 1) // m) * m


def tpu_config():
    """Generation-aware defaults: TensorCores sharing the grid, max row tile,
    and whether to feed the MXU in bf16."""
    try:
        kind = jax.devices()[0].device_kind.lower()
    except Exception:
        kind = ""
    if "v7" in kind:
        # 2 TCs, 64 MiB physical / 32 MiB scoped VMEM per TC; bf16-native MXU.
        return dict(num_cores=2, max_tile=16384, use_bf16_mxu=True)
    if "v6" in kind:
        return dict(num_cores=1, max_tile=16384, use_bf16_mxu=True)
    if "v5" in kind:
        lite = ("lite" in kind) or ("v5e" in kind)
        # v5 family: 16 MiB scoped-VMEM default, no bf16 VPU/EUP -> stay f32.
        return dict(num_cores=1 if lite else 2, max_tile=8192, use_bf16_mxu=False)
    if "v4" in kind:
        return dict(num_cores=2, max_tile=8192, use_bf16_mxu=False)
    return dict(num_cores=1, max_tile=8192, use_bf16_mxu=False)


def _tile_and_steps(n, num_cores, max_tile):
    """Biggest tile that keeps padding waste under one 128-lane block, fits the
    per-generation VMEM budget, and balances the TensorCores."""
    tile = min(max_tile, max(128, _round_up(pl.cdiv(n, num_cores), 128)))
    steps = pl.cdiv(n, tile)
    if num_cores > 1 and steps % num_cores:
        want = _round_up(steps, num_cores)
        t2 = max(128, _round_up(pl.cdiv(n, want), 128))
        if pl.cdiv(n, t2) == want:     # only adopt if it really yields `want` steps
            tile, steps = t2, want
    return tile, steps


# --------------------------------- wrapper -----------------------------------

@partial(jax.jit, static_argnames=("num_cores", "max_tile", "use_bf16_mxu"))
def vanilla_mlp_pallas(x, weights, biases, *, num_cores=None, max_tile=None,
                       use_bf16_mxu=None):
    """x: (N, dim_in); weights[i]: (d_out_i, d_in_i); biases[i]: (d_out_i, 1)."""
    cfg = tpu_config()
    num_cores = cfg["num_cores"] if num_cores is None else num_cores
    max_tile = cfg["max_tile"] if max_tile is None else max_tile
    use_bf16_mxu = cfg["use_bf16_mxu"] if use_bf16_mxu is None else use_bf16_mxu

    num_linear = len(weights)
    N, dim_in = x.shape
    dim_out = weights[-1].shape[0]

    # Feature-major: rows land on the 128-wide lane axis so every activation
    # vreg and the final store are lane-dense.  astype+transpose fuse into one
    # HBM pass under jit.
    # TODO(synk): accept feature-major (dim_in, N) input from the producer to
    # drop this transpose entirely.
    x_t = jnp.transpose(x.astype(jnp.float32))        # (dim_in, N)

    tile, steps = _tile_and_steps(N, num_cores, max_tile)
    kernel = _make_mlp_kernel(num_linear, use_bf16_mxu)

    full = lambda shape: pl.BlockSpec(shape, lambda i: (0, 0))  # VMEM-resident
    in_specs = [pl.BlockSpec((dim_in, tile), lambda i: (0, i))]
    in_specs += [full(w.shape) for w in weights]
    in_specs += [full(b.shape) for b in biases]

    out_t = pl.pallas_call(
        kernel,
        out_shape=jax.ShapeDtypeStruct((dim_out, N), jnp.float32),
        grid=(steps,),
        in_specs=in_specs,
        out_specs=pl.BlockSpec((dim_out, tile), lambda i: (0, i)),
        compiler_params=pltpu.CompilerParams(
            dimension_semantics=("parallel",)),
    )(x_t, *weights, *biases)

    return jnp.transpose(out_t)                       # (N, dim_out)


# --------------------------- parameter construction --------------------------

def init_vanilla_mlp_params(key, dim_in, dim_out, n_neurons, n_hidden_layers,
                            sphere_init_radius=0.5):
    """VanillaMLP sphere_init + weight_norm parameterization.

    Returns weights as (d_out, d_in) (torch layout) and biases as (d_out, 1).
    """
    dims = [dim_in] + [n_neurons] * n_hidden_layers + [dim_out]
    num_linear = n_hidden_layers + 1

    weights, biases = [], []
    for li in range(num_linear):
        d_in, d_out = dims[li], dims[li + 1]
        key, sub = jax.random.split(key)
        is_first = (li == 0)
        is_last = (li == num_linear - 1)

        if is_last:
            # weight ~ N(sqrt(pi)/sqrt(d_in), 1e-4), bias = -radius
            w = (math.sqrt(math.pi) / math.sqrt(d_in)
                 + 1e-4 * jax.random.normal(sub, (d_out, d_in), jnp.float32))
            b = jnp.full((d_out, 1), -sphere_init_radius, jnp.float32)
        elif is_first:
            # weight[:, :3] ~ N(0, sqrt(2)/sqrt(d_out)); weight[:, 3:] = 0; bias = 0
            w = jnp.zeros((d_out, d_in), jnp.float32)
            std = math.sqrt(2.0) / math.sqrt(d_out)
            ncols = min(3, d_in)
            w = w.at[:, :ncols].set(
                std * jax.random.normal(sub, (d_out, ncols), jnp.float32))
            b = jnp.zeros((d_out, 1), jnp.float32)
        else:
            std = math.sqrt(2.0) / math.sqrt(d_out)
            w = std * jax.random.normal(sub, (d_out, d_in), jnp.float32)
            b = jnp.zeros((d_out, 1), jnp.float32)

        # nn.utils.weight_norm (dim=0): v = w, g = ||v||_row  =>  W_eff = v
        v = w
        g = jnp.sqrt(jnp.sum(v * v, axis=1, keepdims=True))
        w_eff = g * v / jnp.maximum(
            jnp.sqrt(jnp.sum(v * v, axis=1, keepdims=True)), 1e-12)

        weights.append(w_eff)     # (d_out, d_in)
        biases.append(b)          # (d_out, 1)

    return weights, biases


# ---------------------------------- main -------------------------------------

if __name__ == "__main__":
    # Small SDF-style MLP: dim_in=3, dim_out=1, n_neurons=32, n_hidden_layers=2.
    dim_in, dim_out, n_neurons, n_hidden_layers = 3, 1, 32, 2

    key = jax.random.PRNGKey(0)
    key, kx1, kx2 = jax.random.split(key, 3)
    weights, biases = init_vanilla_mlp_params(
        key, dim_in, dim_out, n_neurons, n_hidden_layers)

    cfg = tpu_config()

    def mlp_reference(xx, *, mirror_bf16):
        """Pure-JAX reference; `mirror_bf16=True` mirrors the kernel's MXU casts."""
        h = xx.astype(jnp.float32)
        for li, (w, b) in enumerate(zip(weights, biases)):
            if mirror_bf16:
                hm, wm = h.astype(jnp.bfloat16), w.astype(jnp.bfloat16)
            else:
                hm, wm = h, w
            h = jnp.dot(hm, wm.T, preferred_element_type=jnp.float32,
                        precision=jax.lax.Precision.HIGHEST) + b[:, 0]
            if li < len(weights) - 1:
                bh = 100.0 * h
                h = jnp.where(
                    bh > 20.0, h,
                    jnp.log1p(jnp.exp(jnp.minimum(bh, 20.0))) / 100.0)
        return h

    # N=300: partial tail block, no padding; N=20000: multi-step grid.
    for n_pts, kk in ((300, kx1), (20000, kx2)):
        x = jax.random.normal(kk, (n_pts, dim_in), jnp.float32)

        out = jax.block_until_ready(vanilla_mlp_pallas(x, weights, biases))
        assert out.shape == (n_pts, dim_out)
        assert bool(jnp.all(jnp.isfinite(out))), "non-finite output"

        # (1) Strict check vs a reference mirroring the kernel's dtype path.
        ref_mirror = mlp_reference(x, mirror_bf16=cfg["use_bf16_mxu"])
        assert bool(jnp.allclose(out, ref_mirror, atol=2e-3, rtol=2e-3)), \
            "mismatch vs dtype-mirrored reference"

        # (2) Semantics check vs full-f32 HIGHEST-precision (torch-equivalent) math.
        ref_f32 = mlp_reference(x, mirror_bf16=False)
        if cfg["use_bf16_mxu"]:
            atol, rtol = 1e-1, 5e-2   # bf16 MXU path on v6e/v7x
        else:
            atol, rtol = 2e-3, 2e-3   # f32 path on v5 family
        assert bool(jnp.allclose(out, ref_f32, atol=atol, rtol=rtol)), \
            "mismatch vs f32 reference"

    print("KERNEL_OK")
</pallas_src>

<mosaic_0001>
module attributes {stable_mosaic.version = 11 : i64} {
  func.func @kernel(%arg0: i32, %arg1: memref<3x384xf32, #tpu.memory_space<vmem>>, %arg2: memref<32x3xf32, #tpu.memory_space<vmem>>, %arg3: memref<32x32xf32, #tpu.memory_space<vmem>>, %arg4: memref<1x32xf32, #tpu.memory_space<vmem>>, %arg5: memref<32x1xf32, #tpu.memory_space<vmem>>, %arg6: memref<32x1xf32, #tpu.memory_space<vmem>>, %arg7: memref<1x1xf32, #tpu.memory_space<vmem>>, %arg8: memref<1x384xf32, #tpu.memory_space<vmem>>) attributes {dimension_semantics = [#tpu.dimension_semantics<parallel>], iteration_bounds = array<i64: 1>, scalar_prefetch = 0 : i64, scratch_operands = 0 : i64, tpu.core_type = #tpu.core_type<tc>, window_params = [{transform_indices = @transform_0, window_bounds = array<i64: 3, 384>}, {pipeline_mode = #tpu.pipeline_mode<synchronous>, transform_indices = @transform_1, window_bounds = array<i64: 32, 3>}, {pipeline_mode = #tpu.pipeline_mode<synchronous>, transform_indices = @transform_2, window_bounds = array<i64: 32, 32>}, {pipeline_mode = #tpu.pipeline_mode<synchronous>, transform_indices = @transform_3, window_bounds = array<i64: 1, 32>}, {pipeline_mode = #tpu.pipeline_mode<synchronous>, transform_indices = @transform_4, window_bounds = array<i64: 32, 1>}, {pipeline_mode = #tpu.pipeline_mode<synchronous>, transform_indices = @transform_5, window_bounds = array<i64: 32, 1>}, {pipeline_mode = #tpu.pipeline_mode<synchronous>, transform_indices = @transform_6, window_bounds = array<i64: 1, 1>}, {transform_indices = @transform_7, window_bounds = array<i64: 1, 384>}]} {
    %c0 = arith.constant 0 : index
    %c0_0 = arith.constant 0 : index
    %0 = vector.load %arg1[%c0, %c0_0] : memref<3x384xf32, #tpu.memory_space<vmem>>, vector<3x384xf32>
    %c0_1 = arith.constant 0 : index
    %c0_2 = arith.constant 0 : index
    %1 = vector.load %arg2[%c0_1, %c0_2] : memref<32x3xf32, #tpu.memory_space<vmem>>, vector<32x3xf32>
    %c0_3 = arith.constant 0 : index
    %c0_4 = arith.constant 0 : index
    %2 = vector.load %arg5[%c0_3, %c0_4] : memref<32x1xf32, #tpu.memory_space<vmem>>, vector<32x1xf32>
    %cst = arith.constant dense<0.000000e+00> : vector<32x384xf32>
    %3 = tpu.matmul %1, %0, %cst {dimension_numbers = #tpu.dot_dimension_numbers<[1], [0], [0], [1], [0, 0, 1, 1], [], []>} : vector<32x3xf32>, vector<3x384xf32>, vector<32x384xf32> -> vector<32x384xf32>
    %4 = vector.broadcast %2 : vector<32x1xf32> to vector<32x384xf32>
    %5 = arith.addf %3, %4 : vector<32x384xf32>
    %cst_5 = arith.constant 1.000000e+02 : f32
    %6 = vector.broadcast %cst_5 : f32 to vector<32x384xf32>
    %7 = arith.mulf %6, %5 : vector<32x384xf32>
    %cst_6 = arith.constant 2.000000e+01 : f32
    %8 = vector.broadcast %cst_6 : f32 to vector<32x384xf32>
    %9 = arith.minimumf %7, %8 : vector<32x384xf32>
    %10 = math.exp %9 : vector<32x384xf32>
    %11 = math.log1p %10 : vector<32x384xf32>
    %cst_7 = arith.constant 0.00999999977 : f32
    %12 = vector.broadcast %cst_7 : f32 to vector<32x384xf32>
    %13 = arith.mulf %11, %12 : vector<32x384xf32>
    %cst_8 = arith.constant 2.000000e+01 : f32
    %14 = vector.broadcast %cst_8 : f32 to vector<32x384xf32>
    %15 = arith.cmpf ogt, %7, %14 : vector<32x384xf32>
    %16 = arith.select %15, %5, %13 : vector<32x384xi1>, vector<32x384xf32>
    %c0_9 = arith.constant 0 : index
    %c0_10 = arith.constant 0 : index
    %17 = vector.load %arg3[%c0_9, %c0_10] : memref<32x32xf32, #tpu.memory_space<vmem>>, vector<32x32xf32>
    %c0_11 = arith.constant 0 : index
    %c0_12 = arith.constant 0 : index
    %18 = vector.load %arg6[%c0_11, %c0_12] : memref<32x1xf32, #tpu.memory_space<vmem>>, vector<32x1xf32>
    %cst_13 = arith.constant dense<0.000000e+00> : vector<32x384xf32>
    %19 = tpu.matmul %17, %16, %cst_13 {dimension_numbers = #tpu.dot_dimension_numbers<[1], [0], [0], [1], [0, 0, 1, 1], [], []>} : vector<32x32xf32>, vector<32x384xf32>, vector<32x384xf32> -> vector<32x384xf32>
    %20 = vector.broadcast %18 : vector<32x1xf32> to vector<32x384xf32>
    %21 = arith.addf %19, %20 : vector<32x384xf32>
    %cst_14 = arith.constant 1.000000e+02 : f32
    %22 = vector.broadcast %cst_14 : f32 to vector<32x384xf32>
    %23 = arith.mulf %22, %21 : vector<32x384xf32>
    %cst_15 = arith.constant 2.000000e+01 : f32
    %24 = vector.broadcast %cst_15 : f32 to vector<32x384xf32>
    %25 = arith.minimumf %23, %24 : vector<32x384xf32>
    %26 = math.exp %25 : vector<32x384xf32>
    %27 = math.log1p %26 : vector<32x384xf32>
    %cst_16 = arith.constant 0.00999999977 : f32
    %28 = vector.broadcast %cst_16 : f32 to vector<32x384xf32>
    %29 = arith.mulf %27, %28 : vector<32x384xf32>
    %cst_17 = arith.constant 2.000000e+01 : f32
    %30 = vector.broadcast %cst_17 : f32 to vector<32x384xf32>
    %31 = arith.cmpf ogt, %23, %30 : vector<32x384xf32>
    %32 = arith.select %31, %21, %29 : vector<32x384xi1>, vector<32x384xf32>
    %c0_18 = arith.constant 0 : index
    %c0_19 = arith.constant 0 : index
    %33 = vector.load %arg4[%c0_18, %c0_19] : memref<1x32xf32, #tpu.memory_space<vmem>>, vector<1x32xf32>
    %c0_20 = arith.constant 0 : index
    %c0_21 = arith.constant 0 : index
    %34 = vector.load %arg7[%c0_20, %c0_21] : memref<1x1xf32, #tpu.memory_space<vmem>>, vector<1x1xf32>
    %cst_22 = arith.constant dense<0.000000e+00> : vector<1x384xf32>
    %35 = tpu.matmul %33, %32, %cst_22 {dimension_numbers = #tpu.dot_dimension_numbers<[1], [0], [0], [1], [0, 0, 1, 1], [], []>} : vector<1x32xf32>, vector<32x384xf32>, vector<1x384xf32> -> vector<1x384xf32>
    %36 = vector.broadcast %34 : vector<1x1xf32> to vector<1x384xf32>
    %37 = arith.addf %35, %36 : vector<1x384xf32>
    %c0_23 = arith.constant 0 : index
    %c0_24 = arith.constant 0 : index
    %38 = vector.load %arg8[%c0_23, %c0_24] : memref<1x384xf32, #tpu.memory_space<vmem>>, vector<1x384xf32>
    tpu.vector_store %arg8[%c0_23, %c0_24], %37 {strides = array<i32>} : memref<1x384xf32, #tpu.memory_space<vmem>>, vector<1x384xf32>,
    return
  }
  func.func @transform_0(%arg0: i32) -> (i32, i32) {
    %c0_i32 = arith.constant 0 : i32
    %c0_i32_0 = arith.constant 0 : i32
    return %c0_i32, %arg0 : i32, i32
  }
  func.func @transform_1(%arg0: i32) -> (i32, i32) {
    %c0_i32 = arith.constant 0 : i32
    %c0_i32_0 = arith.constant 0 : i32
    %c0_i32_1 = arith.constant 0 : i32
    return %c0_i32, %c0_i32_0 : i32, i32
  }
  func.func @transform_2(%arg0: i32) -> (i32, i32) {
    %c0_i32 = arith.constant 0 : i32
    %c0_i32_0 = arith.constant 0 : i32
    %c0_i32_1 = arith.constant 0 : i32
    return %c0_i32, %c0_i32_0 : i32, i32
  }
  func.func @transform_3(%arg0: i32) -> (i32, i32) {
    %c0_i32 = arith.constant 0 : i32
    %c0_i32_0 = arith.constant 0 : i32
    %c0_i32_1 = arith.constant 0 : i32
    return %c0_i32, %c0_i32_0 : i32, i32
  }
  func.func @transform_4(%arg0: i32) -> (i32, i32) {
    %c0_i32 = arith.constant 0 : i32
    %c0_i32_0 = arith.constant 0 : i32
    %c0_i32_1 = arith.constant 0 : i32
    return %c0_i32, %c0_i32_0 : i32, i32
  }
  func.func @transform_5(%arg0: i32) -> (i32, i32) {
    %c0_i32 = arith.constant 0 : i32
    %c0_i32_0 = arith.constant 0 : i32
    %c0_i32_1 = arith.constant 0 : i32
    return %c0_i32, %c0_i32_0 : i32, i32
  }
  func.func @transform_6(%arg0: i32) -> (i32, i32) {
    %c0_i32 = arith.constant 0 : i32
    %c0_i32_0 = arith.constant 0 : i32
    %c0_i32_1 = arith.constant 0 : i32
    return %c0_i32, %c0_i32_0 : i32, i32
  }
  func.func @transform_7(%arg0: i32) -> (i32, i32) {
    %c0_i32 = arith.constant 0 : i32
    %c0_i32_0 = arith.constant 0 : i32
    return %c0_i32, %arg0 : i32, i32
  }
}

</mosaic_0001>

<bundles_post_ra>
// kernel: vanilla_mlp_pallas.1
= control target key start
LH: loop header
LB: loop body
LE: loop exit
PB: predicated region body
PF: predicated region fallthrough
CT: control target
= control target key end

     0   :  { %s1836_s0 = inlined_call_operand.vmem [shape: f32[3,300], index: 0, kind: input, shape index: {}]   ;;  %s1837_s1 = inlined_call_operand.vmem [shape: f32[32,3], index: 1, kind: input, shape index: {}]   ;;  %s1838_s2 = inlined_call_operand.vmem [shape: f32[32,32], index: 2, kind: input, shape index: {}]   ;;  %s1839_s3 = inlined_call_operand.vmem [shape: f32[1,32], index: 3, kind: input, shape index: {}]   ;;  %s1840_s4 = inlined_call_operand.vmem [shape: f32[32,1], index: 4, kind: input, shape index: {}]   ;;  %s1841_s5 = inlined_call_operand.vmem [shape: f32[32,1], index: 5, kind: input, shape index: {}]   ;;  %s1842_s6 = inlined_call_operand.<no memory space> [shape: f32[1,1], index: 6, kind: input, shape index: {}]   ;;  %s1843_s7 = inlined_call_operand.hbm [shape: f32[1,300], index: 7, kind: output, shape index: {}]  }
   0x1   :  { %v12_v0 = vstv %s1842_s6 }
   0x2   :  { %13 = vst [vmem:[#allocation2] sm:$0x1] %v12_v0 }
   0x3   :  { %v30_v1 = vld [vmem:[%s1836_s0 + $0x8] sm:$0x7]  ;;  %vm75_vm0 = vcmask 1042432   ;;  %v31_v2 = vld [vmem:[%s1837_s1] sm:$0xff]  ;;  %vm62_vm1 = vcmask 23552   ;;  %v33_v5 = vld [vmem:[%s1837_s1 + $0x10] sm:$0xff] }
   0x4   :  { %v32_v3 = vld [vmem:[%s1837_s1 + $0x8] sm:$0xff]  ;;  %1095 = vmatprep.subr.msk.mxu1 %vm75_vm0, %v30_v1  ;;  %1097 = vmatprep.mubr.msk.f32.mxu1 %vm62_vm1, %v31_v2  ;;  %v29_v4 = vld [vmem:[%s1836_s0] sm:$0x77]  ;;  %v1287_v7 = vmov 0.0   ;;  %v1288_v9 = vmov 0   ;;  %v34_v10 = vld [vmem:[%s1837_s1 + $0x18] sm:$0xff] }
   0x5   :  { %1096 = vmatpush3.msk.msra.mxu1 %vm75_vm0, %v30_v1  ;;  %v61_v6 = vcombine.high %v29_v4, %v29_v4  ;;  %146 = vmatprep.mubr.f32.mxu0 %v1287_v7  ;;  %v35_v8 = vld [vmem:[%s1840_s4] sm:$0xff]  ;;  %v37_v11 = vld [vmem:[%s1840_s4 + $0x10] sm:$0xff] }
   0x6   :  { %1098 = vmatmul.mubr.msk.f32.vlgmr.msra.gmra.mrb[0].mxu1 %vm62_vm1, %v32_v3  ;;  %1164 = vset.pattern.permute.xlu0 %v1288_v9 }
   0x7   :  { %1056 = vmatprep.subr.msk.mxu0 %vm75_vm0, %v61_v6  ;;  %1100 = vmatprep.mubr.msk.f32.mxu1 %vm62_vm1, %v33_v5 }
   0x8   :  { %1057 = vmatpush1.msk.msra.mxu0 %vm75_vm0, %v29_v4  ;;  %41 = vperm.xlu0 %1164, %v35_v8  }
   0x9   :  { %14 = vsyncpa [#allocation4], 0  ;;  %1058 = vmatmul.mubr.msk.f32.vlgmr.msra.gmra.mrb[0].mxu0 %vm62_vm1, %v31_v2  ;;  %v36_v12 = vld [vmem:[%s1840_s4 + $0x8] sm:$0xff]  ;;  %1165 = vset.pattern.permute.xlu1 %v1288_v9  ;;  %v38_v13 = vld [vmem:[%s1840_s4 + $0x18] sm:$0xff]  ;;  %vm476_vm2 = vcmask 261120  }
   0xa   :  { %1101 = vmatmul.mubr.msk.f32.gmra.mrb[2].mxu1 %vm62_vm1, %v34_v10  ;;  %152 = vmatprep.mubr.f32.mxu0 %v1287_v7  ;;  %v452_v14 = vld [vmem:[%s1841_s5] sm:$0xff]  ;;  %v453_v15 = vld [vmem:[%s1841_s5 + $0x8] sm:$0xff]  ;;  %v454_v16 = vld [vmem:[%s1841_s5 + $0x10] sm:$0xff] }
   0xb   :  { %51 = vperm.xlu1 %1165, %v37_v11   ;;  %553 = vmatprep.mubr.f32.mxu1 %v1287_v7  ;;  %v455_v17 = vld [vmem:[%s1841_s5 + $0x18] sm:$0xff]  ;;  %v856_v18 = vld [vmem:[#allocation2] sm:$0x1] }
   0xc   :  { %46 = vperm.xlu0 %1164, %v36_v12   ;;  %v1398_v19 = vld [vmem:[%s1838_s2] sm:$0xff] }
   0xd   :  { %1059 = vmatmul.mubr.msk.f32.gmra.mrb[2].mxu0 %vm62_vm1, %v32_v3 }
   0xe   :  { %158 = vmatprep.mubr.f32.mxu0 %v1287_v7 }
   0xf   :  { %56 = vperm.xlu1 %1165, %v38_v13  }
  0x10   :  { %458 = vperm.xlu0 %1164, %v452_v14  }
  0x11   :  { %1060 = vmatmul.mubr.msk.f32.gmra.mrb[4].mxu0 %vm62_vm1, %v33_v5 }
  0x12   :  { %164 = vmatprep.mubr.f32.mxu0 %v1287_v7 }
  0x13   :  { %463 = vperm.xlu1 %1165, %v453_v15  }
  0x14   :  { %468 = vperm.xlu0 %1164, %v454_v16  }
  0x15   :  { %1061 = vmatmul.mubr.msk.f32.gmra.mrb[6].mxu0 %vm62_vm1, %v34_v10 }
  0x16   :  { %1111 = vmatprep.mubr.msk.f32.mxu0 %vm476_vm2, %v1398_v19 }
  0x17   :  { %473 = vperm.xlu1 %1165, %v455_v17  }
  0x18   :  { %859 = vperm.xlu0 %1164, %v856_v18  }
  0x87   :  { %v42_v20 = vpop.permute.xlu0 %41 }
  0x8a   :  { %v52_v21 = vpop.permute.xlu1 %51 }
  0x8b   :  { %v47_v22 = vpop.permute.xlu0 %46 }
  0x8e   :  { %v57_v27 = vpop.permute.xlu1 %56 }
  0xd9   :  { %v1099_v23 = vpop.f32.mrb[0].mxu1 }
  0xda   :  { %v1402_v24 = vadd.f32 %v1099_v23, %v47_v22  ;;  %v237_v25 = vpop.f32.mrb[1].mxu1 }
  0xdb   :  { %v1404_v26 = vadd.f32 %v237_v25, %v42_v20 }
  0xdc   :  { %v1407_v28 = vmul.f32 100.0, %v1402_v24  ;;  %v148_v29 = vpop.f32.mrb[0].mxu0 }
  0xdd   :  { %v1410_v30 = vmul.f32 100.0, %v1404_v26  ;;  %v1412_v31 = vadd.f32 %v148_v29, %v42_v20  ;;  %v150_v32 = vpop.f32.mrb[1].mxu0  ;;  %v1102_v33 = vpop.f32.mrb[2].mxu1 }
  0xde   :  { %v273_v34 = vmin.f32 %v1407_v28, 20.0  ;;  %v1415_v35 = vadd.f32 %v150_v32, %v42_v20  ;;  %v1417_v36 = vadd.f32 %v1102_v33, %v57_v27  ;;  %v247_v37 = vpop.f32.mrb[3].mxu1  ;;  %vm429_vm9 = vcmp.gt.f32.partialorder %v1407_v28, 20.0 }
  0xdf   :  { %v270_v38 = vmin.f32 %v1410_v30, 20.0  ;;  %v1421_v39 = vmul.f32 100.0, %v1412_v31  ;;  %v1423_v40 = vadd.f32 %v247_v37, %v52_v21  ;;  %vm426_vm7 = vcmp.gt.f32.partialorder %v1410_v30, 20.0 }
  0xe0   :  { %v290_v41 = vmul.f32 1.442695, %v273_v34  ;;  %v1426_v42 = vmul.f32 100.0, %v1415_v35  ;;  %v1429_v43 = vmul.f32 100.0, %v1417_v36  ;;  %v154_v44 = vpop.f32.mrb[2].mxu0 }
  0xe1   :  { %v284_v45 = vmul.f32 1.442695, %v270_v38  ;;  %v268_v46 = vmin.f32 %v1421_v39, 20.0  ;;  %v1433_v47 = vmul.f32 100.0, %v1423_v40  ;;  %v156_v48 = vpop.f32.mrb[3].mxu0  ;;  %v1438_v54 = vadd.f32 %v154_v44, %v47_v22 }
  0xe2   :  { %v279_v49 = vmin.f32 %v1429_v43, 20.0  ;;  %v269_v52 = vmin.f32 %v1426_v42, 20.0  ;;  %v1440_v57 = vadd.f32 %v156_v48, %v47_v22  ;;  %vm424_vm11 = vcmp.gt.f32.partialorder %v1421_v39, 20.0 }
  0xe3   :  { %1167 = vpow2.f32 %v284_v45  ;;  %v280_v50 = vmul.f32 1.442695, %v268_v46  ;;  %v276_v51 = vmin.f32 %v1433_v47, 20.0  ;;  %v1445_v60 = vmul.f32 100.0, %v1438_v54 }
  0xe4   :  { %1169 = vpow2.f32 %v290_v41  ;;  %v302_v53 = vmul.f32 1.442695, %v279_v49  ;;  %v160_v55 = vpop.f32.mrb[4].mxu0  ;;  %v1450_v62 = vmul.f32 100.0, %v1440_v57  ;;  %v282_v3 = vmul.f32 1.442695, %v269_v52 }
  0xe5   :  { %1171 = vpow2.f32 %v280_v50  ;;  %v296_v56 = vmul.f32 1.442695, %v276_v51  ;;  %v1442_v58 = vadd.f32 %v160_v55, %v52_v21  ;;  %v162_v59 = vpop.f32.mrb[5].mxu0  ;;  %v271_v0 = vmin.f32 %v1445_v60, 20.0 }
  0xe6   :  { %v1447_v61 = vadd.f32 %v162_v59, %v52_v21  ;;  %v272_v4 = vmin.f32 %v1450_v62, 20.0  ;;  %vm432_vm12 = vcmp.gt.f32.partialorder %v1433_v47, 20.0  ;;  %vm435_vm13 = vcmp.gt.f32.partialorder %v1429_v43, 20.0 }
  0xe7   :  { %v1453_v63 = vmul.f32 100.0, %v1442_v58  ;;  %1173 = vpow2.f32 %v296_v56  ;;  %v286_v8 = vmul.f32 1.442695, %v271_v0  ;;  %vm427_vm14 = vcmp.gt.f32.partialorder %v1445_v60, 20.0 }
  0xe8   :  { %v1457_v1 = vmul.f32 100.0, %v1447_v61  ;;  %v166_v2 = vpop.f32.mrb[6].mxu0  ;;  %1175 = vpow2.f32 %v302_v53  ;;  %v288_v13 = vmul.f32 1.442695, %v272_v4 }
  0xe9   :  { %v274_v5 = vmin.f32 %v1453_v63, 20.0  ;;  %v168_v6 = vpop.f32.mrb[7].mxu0  ;;  %v1461_v9 = vadd.f32 %v166_v2, %v57_v27  ;;  %1177 = vpow2.f32 %v286_v8 }
  0xea   :  { %v275_v11 = vmin.f32 %v1457_v1, 20.0  ;;  %v1464_v12 = vadd.f32 %v168_v6, %v57_v27  ;;  %1179 = vpow2.f32 %v282_v3 }
  0xeb   :  { %v292_v10 = vmul.f32 1.442695, %v274_v5  ;;  %v1467_v14 = vmul.f32 100.0, %v1461_v9 }
  0xec   :  { %v1470_v16 = vmul.f32 100.0, %v1464_v12  ;;  %v294_v22 = vmul.f32 1.442695, %v275_v11 }
  0xed   :  { %v1168_v15 = vpop.eup %1167  ;;  %1181 = vpow2.f32 %v292_v10  ;;  %v277_v18 = vmin.f32 %v1467_v14, 20.0 }
  0xee   :  { %v1472_v17 = vpop.eup %1169  ;;  %v322_v20 = vadd.f32 1.0, %v1168_v15  ;;  %v278_v23 = vmin.f32 %v1470_v16, 20.0  ;;  %1183 = vpow2.f32 %v288_v13  ;;  %v325_v29 = vmul.f32 -0.5, %v1168_v15 }
  0xef   :  { %v1172_v21 = vpop.eup %1171  ;;  %v298_v27 = vmul.f32 1.442695, %v277_v18  ;;  %v349_v33 = vadd.f32 1.0, %v1472_v17  ;;  %v352_v44 = vmul.f32 -0.5, %v1472_v17  ;;  %v328_v46 = vand.u32 2147483647, %v1168_v15 }
  0xf0   :  { %v304_v25 = vadd.f32 1.0, %v1172_v21  ;;  %v307_v32 = vmul.f32 -0.5, %v1172_v21  ;;  %1185 = vlog2.f32 %v322_v20  ;;  %v310_v37 = vand.u32 2147483647, %v1172_v21 }
  0xf1   :  { %v1477_v34 = vpop.eup %1173  ;;  %v300_v41 = vmul.f32 1.442695, %v278_v23  ;;  %v326_v45 = vadd.f32 1.0, %v325_v29  ;;  %v355_v50 = vand.u32 2147483647, %v1472_v17  ;;  %v353_v4 = vadd.f32 1.0, %v352_v44 }
  0xf2   :  { %1187 = vlog2.f32 %v304_v25  ;;  %v1479_v38 = vpop.eup %1175  ;;  %v376_v48 = vadd.f32 1.0, %v1477_v34  ;;  %v308_v49 = vadd.f32 1.0, %v307_v32  ;;  %v379_v51 = vmul.f32 -0.5, %v1477_v34 }
  0xf3   :  { %1189 = vpow2.f32 %v298_v27  ;;  %v1178_v52 = vpop.eup %1177  ;;  %vm1485_vm3 = vcmp.lt.f32.partialorder %v310_v37, 0.0004427343  ;;  %v382_v55 = vand.u32 2147483647, %v1477_v34  ;;  %v403_v56 = vadd.f32 1.0, %v1479_v38 }
  0xf4   :  { %1191 = vpow2.f32 %v294_v22  ;;  %v406_v59 = vmul.f32 -0.5, %v1479_v38  ;;  %v1492_v0 = vpop.eup %1179  ;;  %v331_v2 = vadd.f32 1.0, %v1178_v52  ;;  %v334_v3 = vmul.f32 -0.5, %v1178_v52 }
  0xf5   :  { %1193 = vlog2.f32 %v349_v33  ;;  %v327_v6 = vmul.f32 %v1168_v15, %v326_v45  ;;  %vm1494_vm4 = vcmp.lt.f32.partialorder %v328_v46, 0.0004427343  ;;  %v409_v10 = vand.u32 2147483647, %v1479_v38 }
  0xf6   :  { %1195 = vlog2.f32 %v376_v48  ;;  %v309_v11 = vmul.f32 %v1172_v21, %v308_v49  ;;  %v337_v13 = vand.u32 2147483647, %v1178_v52  ;;  %vm1501_vm5 = vcmp.lt.f32.partialorder %v355_v50, 0.0004427343 }
  0xf7   :  { %1197 = vpow2.f32 %v300_v41  ;;  %v1182_v5 = vpop.eup %1181  ;;  %v380_v25 = vadd.f32 1.0, %v379_v51  ;;  %vm1505_vm6 = vcmp.lt.f32.partialorder %v382_v55, 0.0004427343  ;;  %v407_v27 = vadd.f32 1.0, %v406_v59 }
  0xf8   :  { %1199 = vlog2.f32 %v403_v56  ;;  %v358_v18 = vadd.f32 1.0, %v1182_v5  ;;  %v1499_v20 = vpop.eup %1183  ;;  %v361_v22 = vmul.f32 -0.5, %v1182_v5  ;;  %v335_v21 = vadd.f32 1.0, %v334_v3 }
  0xf9   :  { %1201 = vlog2.f32 %v331_v2  ;;  %v313_v32 = vadd.f32 1.0, %v1492_v0  ;;  %v316_v33 = vmul.f32 -0.5, %v1492_v0  ;;  %v364_v41 = vand.u32 2147483647, %v1182_v5 }
  0xfa   :  { %v1186_v29 = vpop.eup %1185  ;;  %1203 = vlog2.f32 %v358_v18  ;;  %v354_v45 = vmul.f32 %v1472_v17, %v353_v4  ;;  %vm1513_vm8 = vcmp.lt.f32.partialorder %v409_v10, 0.0004427343  ;;  %vm1520_vm10 = vcmp.lt.f32.partialorder %v337_v13, 0.0004427343 }
  0xfb   :  { %v324_v44 = vmul.f32 0.6931472, %v1186_v29  ;;  %1205 = vlog2.f32 %v313_v32  ;;  %v340_v51 = vadd.f32 1.0, %v1499_v20  ;;  %v362_v17 = vadd.f32 1.0, %v361_v22 }
  0xfc   :  { %v1188_v37 = vpop.eup %1187  ;;  %v381_v59 = vmul.f32 %v1477_v34, %v380_v25  ;;  %v317_v2 = vadd.f32 1.0, %v316_v33  ;;  %v336_v10 = vmul.f32 %v1178_v52, %v335_v21  ;;  %v408_v18 = vmul.f32 %v1479_v38, %v407_v27 }
  0xfd   :  { %v1517_v48 = vpop.eup %1189  ;;  %v306_v49 = vmul.f32 0.6931472, %v1188_v37  ;;  %v330_v13 = vsel %vm1494_vm4, %v327_v6, %v324_v44  ;;  %vm1538_vm15 = vcmp.lt.f32.partialorder %v364_v41, 0.0004427343  ;;  %v319_v53 = vand.u32 2147483647, %v1492_v0 }
  0xfe   :  { %v1525_v55 = vpop.eup %1191  ;;  %v385_v56 = vadd.f32 1.0, %v1517_v48  ;;  %v388_v34 = vmul.f32 -0.5, %v1517_v48  ;;  %v414_v25 = vmul.f32 0.01, %v330_v13  ;;  %v363_v27 = vmul.f32 %v1182_v5, %v362_v17 }
  0xff   :  { %v1194_v3 = vpop.eup %1193  ;;  %v312_v4 = vsel %vm1485_vm3, %v309_v11, %v306_v49  ;;  %v391_v21 = vand.u32 2147483647, %v1517_v48  ;;  %v318_v32 = vmul.f32 %v1492_v0, %v317_v2  ;;  %v343_v49 = vmul.f32 -0.5, %v1499_v20 }
 0x100   :  { %v1196_v29 = vpop.eup %1195  ;;  %1207 = vlog2.f32 %v385_v56  ;;  %v351_v52 = vmul.f32 0.6931472, %v1194_v3  ;;  %v412_v38 = vmul.f32 0.01, %v312_v4  ;;  %v438_v5 = vsel %vm426_vm7, %v1404_v26, %v414_v25 }
 0x101   :  { %v1544_v11 = vpop.eup %1197  ;;  %v378_v8 = vmul.f32 0.6931472, %v1196_v29  ;;  %1209 = vlog2.f32 %v340_v51  ;;  %v389_v4 = vadd.f32 1.0, %v388_v34  ;;  %vm1558_vm0 = vcmp.lt.f32.partialorder %v319_v53, 0.0004427343 }
 0x102   :  { %v1200_v6 = vpop.eup %1199  ;;  %v357_v37 = vsel %vm1501_vm5, %v354_v45, %v351_v52  ;;  %v367_v15 = vadd.f32 1.0, %v1525_v55  ;;  %v436_v46 = vsel %vm424_vm11, %v1412_v31, %v412_v38  ;;  %v344_v34 = vadd.f32 1.0, %v343_v49 }
 0x103   :  { %v1202_v33 = vpop.eup %1201  ;;  %v384_v41 = vsel %vm1505_vm6, %v381_v59, %v378_v8  ;;  %v405_v44 = vmul.f32 0.6931472, %v1200_v6  ;;  %v417_v3 = vmul.f32 0.01, %v357_v37  ;;  %v346_v39 = vand.u32 2147483647, %v1499_v20 }
 0x104   :  { %v333_v56 = vmul.f32 0.6931472, %v1202_v33  ;;  %v420_v51 = vmul.f32 0.01, %v384_v41  ;;  %v1204_v17 = vpop.eup %1203  ;;  %1211 = vlog2.f32 %v367_v15  ;;  %v394_v43 = vadd.f32 1.0, %v1544_v11 }
 0x105   :  { %v411_v0 = vsel %vm1513_vm8, %v408_v18, %v405_v44  ;;  %v360_v59 = vmul.f32 0.6931472, %v1204_v17  ;;  %v441_v26 = vsel %vm429_vm9, %v1402_v24, %v417_v3  ;;  %v1206_v2 = vpop.eup %1205  ;;  %v390_v60 = vmul.f32 %v1517_v48, %v389_v4  ;;  %v449_v48 = vld [vmem:[%s1838_s2 + $0x8] sm:$0xff] }
 0x106   :  { %v339_v45 = vsel %vm1520_vm10, %v336_v10, %v333_v56  ;;  %v423_v30 = vmul.f32 0.01, %v411_v0  ;;  %v1136_v18 = vpack.c.bf16 %v441_v26, %v438_v5  ;;  %v444_v29 = vsel %vm432_vm12, %v1423_v40, %v420_v51 }
 0x107   :  { %v415_v13 = vmul.f32 0.01, %v339_v45  ;;  %v315_v10 = vmul.f32 0.6931472, %v1206_v2  ;;  %v366_v28 = vsel %vm1538_vm15, %v363_v27, %v360_v59  ;;  %vm392_vm1 = vcmp.lt.f32.partialorder %v391_v21, 0.0004427343 }
 0x108   :  { %v447_v50 = vsel %vm435_vm13, %v1417_v36, %v423_v30  ;;  %1137 = vmatprep.subr.bf16.mxu0 %v1136_v18  ;;  %v418_v22 = vmul.f32 0.01, %v366_v28  ;;  %v345_v8 = vmul.f32 %v1499_v20, %v344_v34  ;;  %1213 = vlog2.f32 %v394_v43  ;;  %v450_v20 = vld [vmem:[%s1838_s2 + $0x10] sm:$0xff] }
 0x109   :  { %v439_v24 = vsel %vm427_vm14, %v1438_v54, %v415_v13  ;;  %v1140_v31 = vpack.c.bf16 %v447_v50, %v444_v29  ;;  %1139 = vmatpush3.bf16.msra.mxu0 %v1136_v18  ;;  %v321_v36 = vsel %vm1558_vm0, %v318_v32, %v315_v10  ;;  %v370_v54 = vmul.f32 -0.5, %v1525_v55 }
 0x10a   :  { %v1208_v47 = vpop.eup %1207  ;;  %v1130_v40 = vpack.c.bf16 %v439_v24, %v436_v46  ;;  %vm347_vm3 = vcmp.lt.f32.partialorder %v346_v39, 0.0004427343  ;;  %v413_v38 = vmul.f32 0.01, %v321_v36  ;;  %vm425_vm4 = vcmp.gt.f32.partialorder %v1426_v42, 20.0 }
 0x10b   :  { %v1210_v53 = vpop.eup %1209  ;;  %v387_v52 = vmul.f32 0.6931472, %v1208_v47  ;;  %1141 = vmatprep.subr.bf16.mxu0 %v1140_v31  ;;  %vm430_vm5 = vcmp.gt.f32.partialorder %v1453_v63, 20.0  ;;  %vm433_vm6 = vcmp.gt.f32.partialorder %v1467_v14, 20.0  ;;  %v371_v33 = vadd.f32 1.0, %v370_v54 }
 0x10c   :  { %v342_v25 = vmul.f32 0.6931472, %v1210_v53  ;;  %v397_v37 = vmul.f32 -0.5, %v1544_v11  ;;  %vm428_vm7 = vcmp.gt.f32.partialorder %v1450_v62, 20.0  ;;  %v442_v63 = vsel %vm430_vm5, %v1442_v58, %v418_v22  ;;  %v451_v58 = vld [vmem:[%s1838_s2 + $0x18] sm:$0xff] }
 0x10d   :  { %v393_v6 = vsel %vm392_vm1, %v390_v60, %v387_v52  ;;  %1143 = vmatpush3.bf16.msra.mxu0 %v1140_v31  ;;  %v373_v44 = vand.u32 2147483647, %v1525_v55  ;;  %v437_v14 = vsel %vm425_vm4, %v1415_v35, %v413_v38  ;;  %v400_v35 = vand.u32 2147483647, %v1544_v11 }
 0x10e   :  { %v421_v27 = vmul.f32 0.01, %v393_v6  ;;  %v348_v32 = vsel %vm347_vm3, %v345_v8, %v342_v25  ;;  %v1212_v3 = vpop.eup %1211  ;;  %v398_v51 = vadd.f32 1.0, %v397_v37  ;;  %vm431_vm10 = vcmp.gt.f32.partialorder %v1457_v1, 20.0  ;;  %v1631_v1 = vpop.permute.xlu1 %463 }
 0x10f   :  { %v416_v21 = vmul.f32 0.01, %v348_v32  ;;  %v369_v62 = vmul.f32 0.6931472, %v1212_v3  ;;  %vm374_vm8 = vcmp.lt.f32.partialorder %v373_v44, 0.0004427343 }
 0x110   :  { %v445_v41 = vsel %vm433_vm6, %v1461_v9, %v421_v27  ;;  %1112 = vmatmul.mubr.msk.f32.vlgmr.msra.gmra.mrb[8].mxu0 %vm476_vm2, %v449_v48  ;;  %v372_v9 = vmul.f32 %v1525_v55, %v371_v33  ;;  %v399_v4 = vmul.f32 %v1544_v11, %v398_v51  ;;  %vm401_vm9 = vcmp.lt.f32.partialorder %v400_v35, 0.0004427343 }
 0x111   :  { %v1134_v49 = vpack.c.bf16 %v445_v41, %v442_v63  ;;  %v440_v56 = vsel %vm428_vm7, %v1440_v57, %v416_v21  ;;  %1114 = vmatprep.mubr.msk.f32.mxu0 %vm476_vm2, %v450_v20  ;;  %vm434_vm11 = vcmp.gt.f32.partialorder %v1470_v16, 20.0  ;;  %vm1290_vm12 = vmmov 0  }
 0x112   :  { %v1128_v5 = vpack.c.bf16 %v440_v56, %v437_v14  ;;  %v375_v42 = vsel %vm374_vm8, %v372_v9, %v369_v62  ;;  %v1214_v57 = vpop.eup %1213  ;;  %v1641_v2 = vpop.permute.xlu1 %473 }
 0x113   :  { %v396_v17 = vmul.f32 0.6931472, %v1214_v57  ;;  %v419_v0 = vmul.f32 0.01, %v375_v42 }
 0x114   :  { %1129 = vmatprep.subr.bf16.mxu1 %v1128_v5  ;;  %1115 = vmatmul.mubr.msk.f32.gmra.mrb[10].mxu0 %vm476_vm2, %v451_v58 }
 0x115   :  { %1131 = vmatpush1.bf16.msra.mxu1 %v1130_v40  ;;  %933 = vmatprep.mubr.f32.mxu0 %v1287_v7  ;;  %v402_v23 = vsel %vm401_vm9, %v399_v4, %v396_v17  ;;  %v443_v55 = vsel %vm431_vm10, %v1447_v61, %v419_v0  ;;  %v1289_v61 = vmov 0.0|0.0  }
 0x116   :  { %v422_v15 = vmul.f32 0.01, %v402_v23 }
 0x118   :  { %v446_v45 = vsel %vm434_vm11, %v1464_v12, %v422_v15 }
 0x119   :  { %v1132_v59 = vpack.c.bf16 %v446_v45, %v443_v55 }
 0x11b   :  { %1133 = vmatprep.subr.bf16.mxu1 %v1132_v59 }
 0x11c   :  { %1135 = vmatpush1.bf16.msra.mxu1 %v1134_v49 }
 0x11d   :  { %1152 = vmatprep.subr.bf16.mxu1 %v1289_v61 }
 0x11f   :  { %1067 = vmatmul.mubr.msk.f32.vlgmr.msra.gmra.mrb[4].mxu1 %vm476_vm2, %v1398_v19  ;;  %v459_v19 = vpop.permute.xlu0 %458 }
 0x120   :  { %559 = vmatprep.mubr.f32.mxu1 %v1287_v7 }
 0x123   :  { %1068 = vmatmul.mubr.msk.f32.gmra.mrb[6].mxu1 %vm476_vm2, %v449_v48 }
 0x124   :  { %565 = vmatprep.mubr.f32.mxu1 %v1287_v7 }
 0x127   :  { %1069 = vmatmul.mubr.msk.f32.gmra.mrb[8].mxu1 %vm476_vm2, %v450_v20 }
 0x128   :  { %571 = vmatprep.mubr.f32.mxu1 %v1287_v7 }
 0x12b   :  { %1070 = vmatmul.mubr.msk.f32.gmra.mrb[10].mxu1 %vm476_vm2, %v451_v58 }
 0x12c   :  { %1125 = vmatprep.mubr.msk.f32.mxu1 %vm1290_vm12, %v1287_v7  ;;  %v1646_v7 = vpop.permute.xlu0 %468 }
 0x1e3   :  { %v1113_v12 = vpop.f32.mrb[8].mxu0 }
 0x1e4   :  { %v1634_v16 = vadd.f32 %v1113_v12, %v1631_v1  ;;  %v644_v11 = vpop.f32.mrb[9].mxu0 }
 0x1e5   :  { %v1636_v26 = vadd.f32 %v644_v11, %v459_v19 }
 0x1e6   :  { %v1639_v30 = vmul.f32 100.0, %v1634_v16 }
 0x1e7   :  { %v1644_v46 = vmul.f32 100.0, %v1636_v26  ;;  %v1116_v13 = vpop.f32.mrb[10].mxu0 }
 0x1e8   :  { %v680_v18 = vmin.f32 %v1639_v30, 20.0  ;;  %v1650_v29 = vadd.f32 %v1116_v13, %v1641_v2  ;;  %v654_v50 = vpop.f32.mrb[11].mxu0  ;;  %vm836_vm15 = vcmp.gt.f32.partialorder %v1639_v30, 20.0 }
 0x1e9   :  { %v677_v10 = vmin.f32 %v1644_v46, 20.0  ;;  %v1654_v34 = vadd.f32 %v654_v50, %v1646_v7  ;;  %vm833_vm0 = vcmp.gt.f32.partialorder %v1644_v46, 20.0 }
 0x1ea   :  { %v697_v24 = vmul.f32 1.442695, %v680_v18  ;;  %v1657_v28 = vmul.f32 100.0, %v1650_v29 }
 0x1eb   :  { %v691_v31 = vmul.f32 1.442695, %v677_v10  ;;  %v1660_v39 = vmul.f32 100.0, %v1654_v34 }
 0x1ec   :  { %1215 = vpow2.f32 %v697_v24  ;;  %v686_v47 = vmin.f32 %v1657_v28, 20.0  ;;  %vm842_vm4 = vcmp.gt.f32.partialorder %v1657_v28, 20.0 }
 0x1ed   :  { %1217 = vpow2.f32 %v691_v31  ;;  %v683_v40 = vmin.f32 %v1660_v39, 20.0  ;;  %vm839_vm5 = vcmp.gt.f32.partialorder %v1660_v39, 20.0 }
 0x1ee   :  { %v709_v36 = vmul.f32 1.442695, %v686_v47 }
 0x1ef   :  { %v703_v43 = vmul.f32 1.442695, %v683_v40 }
 0x1f0   :  { %1219 = vpow2.f32 %v709_v36 }
 0x1f1   :  { %1221 = vpow2.f32 %v703_v43 }
 0x1f2   :  { %v555_v53 = vpop.f32.mrb[4].mxu1 }
 0x1f3   :  { %v1664_v60 = vadd.f32 %v555_v53, %v459_v19  ;;  %v557_v54 = vpop.f32.mrb[5].mxu1 }
 0x1f4   :  { %v1666_v8 = vadd.f32 %v557_v54, %v459_v19 }
 0x1f5   :  { %v1669_v38 = vmul.f32 100.0, %v1664_v60 }
 0x1f6   :  { %v1216_v52 = vpop.eup %1215  ;;  %v561_v48 = vpop.f32.mrb[6].mxu1  ;;  %v1673_v49 = vmul.f32 100.0, %v1666_v8 }
 0x1f7   :  { %v1218_v22 = vpop.eup %1217  ;;  %v756_v25 = vadd.f32 1.0, %v1216_v52  ;;  %v759_v27 = vmul.f32 -0.5, %v1216_v52  ;;  %v762_v32 = vand.u32 2147483647, %v1216_v52  ;;  %v675_v37 = vmin.f32 %v1669_v38, 20.0  ;;  %v563_v63 = vpop.f32.mrb[7].mxu1 }
 0x1f8   :  { %v729_v6 = vadd.f32 1.0, %v1218_v22  ;;  %v732_v20 = vmul.f32 -0.5, %v1218_v22  ;;  %v735_v33 = vand.u32 2147483647, %v1218_v22  ;;  %v676_v57 = vmin.f32 %v1673_v49, 20.0 }
 0x1f9   :  { %1223 = vlog2.f32 %v756_v25  ;;  %v760_v56 = vadd.f32 1.0, %v759_v27  ;;  %v687_v3 = vmul.f32 1.442695, %v675_v37  ;;  %vm1675_vm13 = vcmp.lt.f32.partialorder %v762_v32, 0.0004427343 }
 0x1fa   :  { %v1220_v21 = vpop.eup %1219  ;;  %1225 = vlog2.f32 %v729_v6  ;;  %v567_v5 = vpop.f32.mrb[8].mxu1  ;;  %v733_v62 = vadd.f32 1.0, %v732_v20  ;;  %vm1679_vm14 = vcmp.lt.f32.partialorder %v735_v33, 0.0004427343  ;;  %v1686_v4 = vadd.f32 %v561_v48, %v1631_v1 }
 0x1fb   :  { %v1222_v41 = vpop.eup %1221  ;;  %v810_v44 = vadd.f32 1.0, %v1220_v21  ;;  %v569_v51 = vpop.f32.mrb[9].mxu1  ;;  %v813_v35 = vmul.f32 -0.5, %v1220_v21  ;;  %v816_v17 = vand.u32 2147483647, %v1220_v21  ;;  %v1689_v0 = vadd.f32 %v563_v63, %v1631_v1 }
 0x1fc   :  { %v783_v14 = vadd.f32 1.0, %v1222_v41  ;;  %v786_v42 = vmul.f32 -0.5, %v1222_v41  ;;  %v1692_v23 = vadd.f32 %v567_v5, %v1646_v7  ;;  %v761_v15 = vmul.f32 %v1216_v52, %v760_v56 }
 0x1fd   :  { %1227 = vlog2.f32 %v810_v44  ;;  %v789_v55 = vand.u32 2147483647, %v1222_v41  ;;  %v689_v45 = vmul.f32 1.442695, %v676_v57  ;;  %v1696_v59 = vadd.f32 %v569_v51, %v1646_v7 }
 0x1fe   :  { %1229 = vlog2.f32 %v783_v14  ;;  %v573_v19 = vpop.f32.mrb[10].mxu1  ;;  %v734_v12 = vmul.f32 %v1218_v22, %v733_v62  ;;  %v1699_v11 = vmul.f32 100.0, %v1686_v4  ;;  %v1702_v13 = vmul.f32 100.0, %v1689_v0 }
 0x1ff   :  { %1231 = vpow2.f32 %v687_v3  ;;  %v1705_v1 = vmul.f32 100.0, %v1692_v23  ;;  %v575_v18 = vpop.f32.mrb[11].mxu1  ;;  %v814_v10 = vadd.f32 1.0, %v813_v35  ;;  %v787_v24 = vadd.f32 1.0, %v786_v42 }
 0x200   :  { %1233 = vpow2.f32 %v689_v45  ;;  %v1708_v31 = vmul.f32 100.0, %v1696_v59  ;;  %vm1710_vm1 = vcmp.lt.f32.partialorder %v816_v17, 0.0004427343  ;;  %v678_v36 = vmin.f32 %v1699_v11, 20.0 }
 0x201   :  { %v679_v43 = vmin.f32 %v1702_v13, 20.0  ;;  %vm1716_vm3 = vcmp.lt.f32.partialorder %v789_v55, 0.0004427343  ;;  %v681_v54 = vmin.f32 %v1705_v1, 20.0  ;;  %v1722_v22 = vadd.f32 %v573_v19, %v1641_v2 }
 0x202   :  { %v693_v6 = vmul.f32 1.442695, %v678_v36  ;;  %v682_v32 = vmin.f32 %v1708_v31, 20.0  ;;  %v815_v37 = vmul.f32 %v1220_v21, %v814_v10  ;;  %v788_v63 = vmul.f32 %v1222_v41, %v787_v24 }
 0x203   :  { %v1224_v50 = vpop.eup %1223  ;;  %v695_v27 = vmul.f32 1.442695, %v679_v43  ;;  %v699_v3 = vmul.f32 1.442695, %v681_v54  ;;  %v1735_v51 = vmul.f32 100.0, %v1722_v22  ;;  %v1746_v30 = vadd.f32 %v575_v18, %v1641_v2 }
 0x204   :  { %v1226_v7 = vpop.eup %1225  ;;  %v758_v47 = vmul.f32 0.6931472, %v1224_v50  ;;  %1235 = vpow2.f32 %v693_v6  ;;  %v701_v35 = vmul.f32 1.442695, %v682_v32  ;;  %vm831_vm7 = vcmp.gt.f32.partialorder %v1669_v38, 20.0 }
 0x205   :  { %v731_v53 = vmul.f32 0.6931472, %v1226_v7  ;;  %1237 = vpow2.f32 %v695_v27  ;;  %v1755_v28 = vmul.f32 100.0, %v1746_v30  ;;  %vm832_vm8 = vcmp.gt.f32.partialorder %v1673_v49, 20.0 }
 0x206   :  { %v764_v25 = vsel %vm1675_vm13, %v761_v15, %v758_v47  ;;  %vm834_vm9 = vcmp.gt.f32.partialorder %v1699_v11, 20.0  ;;  %vm835_vm10 = vcmp.gt.f32.partialorder %v1702_v13, 20.0 }
 0x207   :  { %v1228_v48 = vpop.eup %1227  ;;  %v824_v20 = vmul.f32 0.01, %v764_v25  ;;  %v737_v33 = vsel %vm1679_vm14, %v734_v12, %v731_v53  ;;  %v685_v12 = vmin.f32 %v1755_v28, 20.0 }
 0x208   :  { %v1230_v44 = vpop.eup %1229  ;;  %v821_v14 = vmul.f32 0.01, %v737_v33  ;;  %v812_v56 = vmul.f32 0.6931472, %v1228_v48 }
 0x209   :  { %v1729_v5 = vpop.eup %1231  ;;  %v848_v58 = vsel %vm836_vm15, %v1634_v16, %v824_v20  ;;  %v785_v62 = vmul.f32 0.6931472, %v1230_v44  ;;  %v707_v50 = vmul.f32 1.442695, %v685_v12 }
 0x20a   :  { %v845_v21 = vsel %vm833_vm0, %v1636_v26, %v821_v14  ;;  %v818_v41 = vsel %vm1710_vm1, %v815_v37, %v812_v56  ;;  %v711_v9 = vadd.f32 1.0, %v1729_v5  ;;  %v684_v26 = vmin.f32 %v1735_v51, 20.0  ;;  %v1234_v46 = vpop.eup %1233 }
 0x20b   :  { %v1153_v42 = vpack.c.bf16 %v848_v58, %v845_v21  ;;  %v830_v57 = vmul.f32 0.01, %v818_v41  ;;  %v791_v16 = vsel %vm1716_vm3, %v788_v63, %v785_v62  ;;  %v720_v19 = vadd.f32 1.0, %v1234_v46 }
 0x20c   :  { %v827_v17 = vmul.f32 0.01, %v791_v16  ;;  %1239 = vlog2.f32 %v711_v9  ;;  %v705_v45 = vmul.f32 1.442695, %v684_v26  ;;  %v714_v39 = vmul.f32 -0.5, %v1729_v5 }
 0x20d   :  { %v854_v15 = vsel %vm842_vm4, %v1650_v29, %v830_v57  ;;  %1241 = vpow2.f32 %v699_v3  ;;  %1154 = vmatpush3.bf16.msra.mxu1 %v1153_v42  ;;  %v1761_v29 = vld [vmem:[%s1839_s3] sm:$0x1]  ;;  %v723_v47 = vmul.f32 -0.5, %v1234_v46  ;;  %v717_v53 = vand.u32 2147483647, %v1729_v5  ;;  %s1292_s3 = smov [#allocation3]  }
 0x20e   :  { %v851_v55 = vsel %vm839_vm5, %v1654_v34, %v827_v17  ;;  %1243 = vpow2.f32 %v701_v35  ;;  %1155 = vmatprep.subr.bf16.mxu1 %v1289_v61  ;;  %v1236_v34 = vpop.eup %1235  ;;  %v715_v7 = vadd.f32 1.0, %v714_v39  ;;  %v726_v63 = vand.u32 2147483647, %v1234_v46  ;;  %s1048_s11 = sshll.u32 %s1292_s3, 4  ;;  %s1049_s11 = int_to_ptr.vmem [resolvable:$true] %s1048_s11 }
 0x20f   :  { %v1156_v2 = vpack.c.bf16 %v854_v15, %v851_v55  ;;  %1245 = vpow2.f32 %v705_v45  ;;  %v1238_v18 = vpop.eup %1237  ;;  %v738_v61 = vadd.f32 1.0, %v1236_v34  ;;  %v741_v36 = vmul.f32 -0.5, %v1236_v34  ;;  %s1263_s12 = scalar_lea.vmem %s1049_s11, 48  ;;  %s1267_s13 = scalar_lea.vmem %s1049_s11, 64 }
 0x210   :  { %1247 = vlog2.f32 %v720_v19  ;;  %v747_v10 = vadd.f32 1.0, %v1238_v18  ;;  %v716_v27 = vmul.f32 %v1729_v5, %v715_v7  ;;  %v724_v32 = vadd.f32 1.0, %v723_v47  ;;  %p1264_p0 = scmp.ne.s32.totalorder %s1049_s11, %s1263_s12  ;;  %p1268_p1 = scmp.lt.s32.totalorder %s1049_s11, %s1049_s11 }
 0x211   :  { %1157 = vmatpush3.bf16.msra.mxu1 %v1156_v2  ;;  %1249 = vlog2.f32 %v738_v61  ;;  %v750_v48 = vmul.f32 -0.5, %v1238_v18  ;;  %v742_v33 = vadd.f32 1.0, %v741_v36  ;;  %vm1777_vm6 = vcmp.lt.f32.partialorder %v717_v53, 0.0004427343  ;;  %p1269_p2 = scmp.lt.s32.totalorder %s1267_s13, %s1263_s12 }
 0x212   :  { %1251 = vpow2.f32 %v707_v50  ;;  %v744_v3 = vand.u32 2147483647, %v1236_v34  ;;  %v725_v58 = vmul.f32 %v1234_v46, %v724_v32  ;;  %vm1788_vm11 = vcmp.lt.f32.partialorder %v726_v63, 0.0004427343 }
 0x213   :  { %1253 = vlog2.f32 %v747_v10  ;;  %v751_v62 = vadd.f32 1.0, %v750_v48  ;;  %v743_v41 = vmul.f32 %v1236_v34, %v742_v33  ;;  %v753_v35 = vand.u32 2147483647, %v1238_v18  ;;  %p1270_p3 = por %p1269_p2, %p1268_p1 }
 0x214   :  { %1126 = vmatmul.mubr.msk.f32.vlgmr.msra.gmra.mrb[12].mxu1 %vm476_vm2, %v1761_v29  ;;  %vm745_vm12 = vcmp.lt.f32.partialorder %v744_v3, 0.0004427343  ;;  %vm837_vm1 = vcmp.gt.f32.partialorder %v1705_v1, 20.0  ;;  %vm840_vm3 = vcmp.gt.f32.partialorder %v1735_v51, 20.0  ;;  %vm838_vm5 = vcmp.gt.f32.partialorder %v1708_v31, 20.0  ;;  %v860_v31 = vpop.permute.xlu0 %859 }
 0x215   :  { %v752_v12 = vmul.f32 %v1238_v18, %v751_v62  ;;  %vm754_vm13 = vcmp.lt.f32.partialorder %v753_v35, 0.0004427343  ;;  %v862_v35 = vlaneseq  ;;  %p1271_p4 = pnand %p1270_p3, %p1264_p0 }
 0x216   :  { %v1240_v24 = vpop.eup %1239 }
 0x217   :  { %v1766_v40 = vpop.eup %1241  ;;  %v713_v54 = vmul.f32 0.6931472, %v1240_v24 }
 0x218   :  { %v1768_v43 = vpop.eup %1243  ;;  %v765_v52 = vadd.f32 1.0, %v1766_v40  ;;  %v768_v5 = vmul.f32 -0.5, %v1766_v40  ;;  %v771_v55 = vand.u32 2147483647, %v1766_v40 }
 0x219   :  { %v774_v25 = vadd.f32 1.0, %v1768_v43  ;;  %v1773_v6 = vpop.eup %1245  ;;  %v719_v56 = vsel %vm1777_vm6, %v716_v27, %v713_v54  ;;  %v777_v34 = vmul.f32 -0.5, %v1768_v43  ;;  %vm841_vm6 = vcmp.gt.f32.partialorder %v1755_v28, 20.0 }
 0x21a   :  { %1255 = vlog2.f32 %v765_v52  ;;  %v1248_v20 = vpop.eup %1247  ;;  %v792_v37 = vadd.f32 1.0, %v1773_v6  ;;  %v819_v57 = vmul.f32 0.01, %v719_v56  ;;  %v795_v17 = vmul.f32 -0.5, %v1773_v6 }
 0x21b   :  { %1257 = vlog2.f32 %v774_v25  ;;  %v722_v14 = vmul.f32 0.6931472, %v1248_v20  ;;  %v1250_v21 = vpop.eup %1249  ;;  %v769_v46 = vadd.f32 1.0, %v768_v5  ;;  %v798_v7 = vand.u32 2147483647, %v1773_v6 }
 0x21c   :  { %1259 = vlog2.f32 %v792_v37  ;;  %v1252_v42 = vpop.eup %1251  ;;  %v740_v16 = vmul.f32 0.6931472, %v1250_v21  ;;  %v843_v10 = vsel %vm831_vm7, %v1664_v60, %v819_v57  ;;  %v796_v24 = vadd.f32 1.0, %v795_v17 }
 0x21d   :  { %v728_v26 = vsel %vm1788_vm11, %v725_v58, %v722_v14  ;;  %v1254_v15 = vpop.eup %1253  ;;  %v801_v45 = vadd.f32 1.0, %v1252_v42  ;;  %v770_v52 = vmul.f32 %v1766_v40, %v769_v46  ;;  %vm772_vm14 = vcmp.lt.f32.partialorder %v771_v55, 0.0004427343 }
 0x21e   :  { %v746_v2 = vsel %vm745_vm12, %v743_v41, %v740_v16  ;;  %v749_v19 = vmul.f32 0.6931472, %v1254_v15  ;;  %v820_v61 = vmul.f32 0.01, %v728_v26  ;;  %v778_v27 = vadd.f32 1.0, %v777_v34 }
 0x21f   :  { %v822_v39 = vmul.f32 0.01, %v746_v2  ;;  %1261 = vlog2.f32 %v801_v45  ;;  %v804_v32 = vmul.f32 -0.5, %v1252_v42  ;;  %v797_v40 = vmul.f32 %v1773_v6, %v796_v24 }
 0x220   :  { %v755_v47 = vsel %vm754_vm13, %v752_v12, %v749_v19  ;;  %v844_v60 = vsel %vm832_vm8, %v1666_v8, %v820_v61  ;;  %vm799_vm15 = vcmp.lt.f32.partialorder %v798_v7, 0.0004427343  ;;  %v779_v14 = vmul.f32 %v1768_v43, %v778_v27 }
 0x221   :  { %v846_v18 = vsel %vm834_vm9, %v1686_v4, %v822_v39  ;;  %v823_v54 = vmul.f32 0.01, %v755_v47  ;;  %v780_v4 = vand.u32 2147483647, %v1768_v43  ;;  %v805_v56 = vadd.f32 1.0, %v804_v32 }
 0x222   :  { %v1146_v25 = vpack.c.bf16 %v846_v18, %v843_v10  ;;  %v807_v8 = vand.u32 2147483647, %v1252_v42  ;;  %v1291_v57 = vmov 1966171168  }
 0x223   :  { %v847_v20 = vsel %vm835_vm10, %v1689_v0, %v823_v54  ;;  %vm781_vm0 = vcmp.lt.f32.partialorder %v780_v4, 0.0004427343  ;;  %v806_v62 = vmul.f32 %v1252_v42, %v805_v56  ;;  %v863_v42 = vshrl.u32 %v862_v35, 7 }
 0x224   :  { %v1256_v50 = vpop.eup %1255  ;;  %v1144_v33 = vpack.c.bf16 %v847_v20, %v844_v60  ;;  %vm808_vm4 = vcmp.lt.f32.partialorder %v807_v8, 0.0004427343  ;;  %v1015_v16 = vunpack.c.l.s4 %v1291_v57 }
 0x225   :  { %v1258_v36 = vpop.eup %1257  ;;  %v767_v53 = vmul.f32 0.6931472, %v1256_v50  ;;  %v864_v17 = vsub.s32 0, %v863_v42 }
 0x226   :  { %v1260_v48 = vpop.eup %1259  ;;  %v776_v37 = vmul.f32 0.6931472, %v1258_v36  ;;  %1145 = vmatprep.subr.bf16.mxu0 %v1144_v33  ;;  %v1016_v26 = vunpack.c.0.s8 %v1015_v16 }
 0x227   :  { %v773_v38 = vsel %vm772_vm14, %v770_v52, %v767_v53  ;;  %v794_v11 = vmul.f32 0.6931472, %v1260_v48  ;;  %1147 = vmatpush1.bf16.msra.mxu0 %v1146_v25  ;;  %v865_v28 = vrot.slane %v860_v31, %v864_v17 }
 0x228   :  { %v825_v63 = vmul.f32 0.01, %v773_v38  ;;  %v782_v0 = vsel %vm781_vm0, %v779_v14, %v776_v37 }
 0x229   :  { %v800_v44 = vsel %vm799_vm15, %v797_v40, %v794_v11  ;;  %v1262_v13 = vpop.eup %1261  ;;  %v826_v43 = vmul.f32 0.01, %v782_v0 }
 0x22a   :  { %v828_v49 = vmul.f32 0.01, %v800_v44  ;;  %v849_v6 = vsel %vm837_vm1, %v1692_v23, %v825_v63  ;;  %v803_v58 = vmul.f32 0.6931472, %v1262_v13 }
 0x22b   :  { %v850_v1 = vsel %vm838_vm5, %v1696_v59, %v826_v43 }
 0x22c   :  { %v852_v3 = vsel %vm840_vm3, %v1722_v22, %v828_v49  ;;  %v809_v21 = vsel %vm808_vm4, %v806_v62, %v803_v58 }
 0x22d   :  { %v1150_v5 = vpack.c.bf16 %v852_v3, %v849_v6  ;;  %v829_v41 = vmul.f32 0.01, %v809_v21 }
 0x22f   :  { %v853_v51 = vsel %vm841_vm6, %v1746_v30, %v829_v41  ;;  %v1019_v30 = vsub.s32 %v1016_v26, %v863_v42 }
 0x230   :  { %v1148_v9 = vpack.c.bf16 %v853_v51, %v850_v1 }
 0x232   :  { %1149 = vmatprep.subr.bf16.mxu0 %v1148_v9 }
 0x233   :  { %1151 = vmatpush1.bf16.msra.mxu0 %v1150_v5 }
 0x236   :  { %1075 = vmatmul.mubr.msk.f32.vlgmr.msra.gmra.mrb[12].mxu0 %vm476_vm2, %v1761_v29  ;;  %vm1039_vm2 = vcmp.lt.s32.totalorder %v862_v35, 384 }
 0x2e7   :  { %v1006_v23 = vpop.f32.mrb[12].mxu1 }
 0x2e8   :  { %v1127_v22 = vpop.f32.mrb[13].mxu1  ;;  %v1007_v55 = vadd.f32 %v1006_v23, %v865_v28 }
 0x2ea   :  { %v1027_v19 = vrot.slane %v1007_v55, %v1019_v30 }
 0x309   :  { %v935_v15 = vpop.f32.mrb[12].mxu0 }
 0x30a   :  { %v936_v59 = vadd.f32 %v935_v15, %v865_v28  ;;  %v937_v46 = vpop.f32.mrb[13].mxu0 }
 0x30b   :  { %v938_v45 = vadd.f32 %v937_v46, %v865_v28 }
 0x30d   :  { %v1013_v2 = vcombine.low %v936_v59, %v938_v45 }
 0x30f   :  { %v1020_v12 = vrot.slane %v1013_v2, %v1019_v30 }
 0x311   :  { %v1028_v29 = vcombine.low %v1020_v12, %v1027_v19 }
 0x313   :  { %v1035_v34 = vrot.slane %v1028_v29, %v1019_v30 }
 0x315   :  { %1041 = vst.msk [vmem:[#allocation3] sm:$0x7] %vm1039_vm2, %v1035_v34 }
 0x316   :  { %1274 = shalt.err (!%p1271_p4)
}
 0x317   :  { %s1275_s15 = scalar_lea.hbm %s1843_s7, 48 }
 0x318   :  { %p1276_p5 = scmp.ne.s32.totalorder %s1843_s7, %s1275_s15  ;;  %p1279_p6 = scmp.lt.u32.totalorder %s1275_s15, %s1843_s7 }
 0x31a   :  { %p1281_p7 = pnand %p1279_p6, %p1276_p5 }
 0x31c   :  { %1284 = shalt.err (!%p1281_p7)
}
 0x31d   :  { %1051 = dma.vmem_to_hbm [thread:$0]  %s1049_s11, 48, %s1843_s7, [#allocation4]  }
 0x31e   :  { %1285 = dma.done.wait [#allocation4], 48  }
 0x31f   :  { %1286 = vsyncadd [#allocation4], 4294967248 }
 0x320   :  { %1055 = vsyncpa [#allocation4], 1 }

</bundles_post_ra>
